<compile_context>
chip_gen: v7x
topology: tpu7x:2x2x1
jax: 0.10.0
libtpu: 0.0.40
codegen_flags: <defaults>
</compile_context>

<pallas_src>
import functools

import jax
import jax.numpy as jnp
from jax import lax
from jax.experimental import pallas as pl
from jax.experimental.pallas import tpu as pltpu


def _log_sigmoid(x):
    # Numerically stable log(sigmoid(x)) = min(x, 0) - log1p(exp(-|x|)).
    return jnp.minimum(x, 0.0) - jnp.log1p(jnp.exp(-jnp.abs(x)))


def _round_up(x, m):
    return (x + m - 1) // m * m


def _block_loss(ctx_sum_f32, tgt_f32, base, num_pos, num_valid):
    """[TB, Dp] context-sums and target rows -> masked sum of per-row logsigmoids."""
    TB = ctx_sum_f32.shape[0]
    score = jnp.sum(ctx_sum_f32 * tgt_f32, axis=1, keepdims=True)         # [TB, 1]
    rows = base + lax.broadcasted_iota(jnp.int32, (TB, 1), 0)
    sign = jnp.where(rows < num_pos, 1.0, -1.0)                           # +pos / -neg
    valid = rows < num_valid                                              # mask pad rows
    ls = _log_sigmoid(sign * score)
    return jnp.sum(jnp.where(valid, ls, 0.0))


# --------------------------------------------------------------------------------
# Path A: small vocab -- tables resident in VMEM, in-VMEM row gather (no manual DMA)
# --------------------------------------------------------------------------------
def _cbow_resident_kernel(ctx_idx_ref, tgt_idx_ref,       # SMEM: [B_pad*C], [B_pad]
                          u_tbl_ref, v_tbl_ref,           # VMEM-resident [V, Dp]
                          out_ref,                        # [1, 128] f32 lane-dense
                          ctx_sum_buf, tgt_buf,           # VMEM scratch [TB, Dp] f32
                          *, C, num_pos, num_valid):
    TB = tgt_buf.shape[0]
    base = pl.program_id(0) * TB

    def gather_row(r, carry):
        row = base + r
        tgt = tgt_idx_ref[row]
        tgt_buf[pl.ds(r, 1), :] = v_tbl_ref[pl.ds(tgt, 1), :].astype(jnp.float32)
        csum = u_tbl_ref[pl.ds(ctx_idx_ref[row * C], 1), :].astype(jnp.float32)
        for c in range(1, C):                              # C is small & static
            idx = ctx_idx_ref[row * C + c]
            csum = csum + u_tbl_ref[pl.ds(idx, 1), :].astype(jnp.float32)
        ctx_sum_buf[pl.ds(r, 1), :] = csum
        return carry

    lax.fori_loop(0, TB, gather_row, 0)

    partial = _block_loss(ctx_sum_buf[...], tgt_buf[...], base, num_pos, num_valid)
    out_ref[...] = jnp.broadcast_to(partial.reshape(1, 1), (1, 128)).astype(jnp.float32)


# --------------------------------------------------------------------------------
# Path B: large vocab -- tables stay in HBM, double-buffered manual row-gather DMAs
# --------------------------------------------------------------------------------
def _cbow_gather_kernel(ctx_idx_ref, tgt_idx_ref,          # SMEM: [B_pad*C], [B_pad]
                        u_hbm, v_hbm,                      # HBM refs [V, Dp] (pl.ANY)
                        out_ref,                           # [1, 128] f32 lane-dense
                        u_buf, v_buf,                      # VMEM (2, C*TB, Dp)/(2, TB, Dp)
                        sem_u, sem_v,                      # DMA sems, one per slot
                        *, C, num_pos, num_valid):
    TB = v_buf.shape[1]
    b = pl.program_id(0)
    nb = pl.num_programs(0)
    slot = b % 2

    def issue(block, slot_):
        base = block * TB

        def row_issue(r, carry):
            row = base + r
            tgt = tgt_idx_ref[row]
            pltpu.make_async_copy(v_hbm.at[pl.ds(tgt, 1), :],
                                  v_buf.at[slot_, pl.ds(r, 1), :],
                                  sem_v.at[slot_]).start()
            for c in range(C):
                idx = ctx_idx_ref[row * C + c]
                pltpu.make_async_copy(u_hbm.at[pl.ds(idx, 1), :],
                                      u_buf.at[slot_, pl.ds(c * TB + r, 1), :],
                                      sem_u.at[slot_]).start()
            return carry

        lax.fori_loop(0, TB, row_issue, 0)

    def wait_slot(slot_):
        # One shared DMA semaphore per slot; one wait per issued copy (wait descriptor
        # only needs matching sizes -- same idiom as the jax paged-attention kernel).
        # TODO(synk): collapse into a single byte-counted wait per slot.
        def row_wait(r, carry):
            pltpu.make_async_copy(v_hbm.at[pl.ds(0, 1), :],
                                  v_buf.at[slot_, pl.ds(r, 1), :],
                                  sem_v.at[slot_]).wait()
            for c in range(C):
                pltpu.make_async_copy(u_hbm.at[pl.ds(0, 1), :],
                                      u_buf.at[slot_, pl.ds(c * TB + r, 1), :],
                                      sem_u.at[slot_]).wait()
            return carry

        lax.fori_loop(0, TB, row_wait, 0)

    # Prime the pipeline with the first block's gather.
    @pl.when(b == 0)
    def _():
        issue(0, 0)

    # Prefetch the NEXT block into the other slot before touching this block's data,
    # so the gather DMA latency overlaps with this block's compute (P4).
    @pl.when(b + 1 < nb)
    def _():
        issue(b + 1, (b + 1) % 2)

    wait_slot(slot)

    # Context sum over C slabs of [TB, Dp]; rows are cast from the table's native
    # dtype to f32 here (no wrapper-side astype of the whole table).
    ctx_sum = u_buf[slot, pl.ds(0, TB), :].astype(jnp.float32)
    for c in range(1, C):
        ctx_sum = ctx_sum + u_buf[slot, pl.ds(c * TB, TB), :].astype(jnp.float32)
    tgt = v_buf[slot].astype(jnp.float32)

    partial = _block_loss(ctx_sum, tgt, b * TB, num_pos, num_valid)
    out_ref[...] = jnp.broadcast_to(partial.reshape(1, 1), (1, 128)).astype(jnp.float32)


# --------------------------------------------------------------------------------
# Wrapper
# --------------------------------------------------------------------------------
def cbow_forward(pos_u, pos_v, neg_u, neg_v, u_emb, v_emb, *,
                 block_b=128,
                 resident_table_budget_bytes=8 * 1024 * 1024,
                 force_gather=False):
    """Negative CBOW loss, matching CBOWModel.forward.

    pos_u: [Bp, C] int32, pos_v: [Bp] int32, neg_u: [Bn, C] int32, neg_v: [Bn] int32,
    u_emb / v_emb: [V, D] float tables (kept in their native dtype).
    """
    Bp, C = pos_u.shape
    Bn, Cn = neg_u.shape
    assert Cn == C, "context window size must match between pos_u and neg_u"
    V, D = u_emb.shape
    assert v_emb.shape == (V, D)
    B = Bp + Bn

    # Pad embedding_dim to a lane multiple (zero columns do not change dot products).
    # TODO(synk): store the tables pre-padded in production to avoid this copy.
    Dp = _round_up(D, 128)
    if Dp != D:
        u_emb = jnp.pad(u_emb, ((0, 0), (0, Dp - D)))
        v_emb = jnp.pad(v_emb, ((0, 0), (0, Dp - D)))

    # Fuse positive and negative examples (positives first); pad batch to the block.
    ctx_idx = jnp.concatenate([pos_u, neg_u], axis=0).astype(jnp.int32)        # [B, C]
    tgt_idx = jnp.concatenate([pos_v.reshape(-1), neg_v.reshape(-1)],
                              axis=0).astype(jnp.int32)                        # [B]

    TB = _round_up(min(int(block_b), _round_up(B, 8)), 8)
    num_blocks = pl.cdiv(B, TB)
    B_pad = num_blocks * TB
    if B_pad != B:
        ctx_idx = jnp.pad(ctx_idx, ((0, B_pad - B), (0, 0)))
        tgt_idx = jnp.pad(tgt_idx, (0, B_pad - B))
    ctx_idx = ctx_idx.reshape(-1)          # flat 1-D => SMEM stays at raw size

    itemsize = u_emb.dtype.itemsize
    table_bytes = 2 * V * Dp * itemsize    # both tables
    use_resident = ((not force_gather) and u_emb.dtype == jnp.float32
                    and 2 * table_bytes <= resident_table_budget_bytes)

    out_shape = jax.ShapeDtypeStruct((num_blocks, 128), jnp.float32)
    out_spec = pl.BlockSpec((1, 128), lambda b, ctx, tgt: (b, 0))

    if use_resident:
        kernel = functools.partial(_cbow_resident_kernel,
                                   C=C, num_pos=Bp, num_valid=B)
        grid_spec = pltpu.PrefetchScalarGridSpec(
            num_scalar_prefetch=2,
            grid=(num_blocks,),
            in_specs=[
                pl.BlockSpec((V, Dp), lambda b, ctx, tgt: (0, 0)),  # resident u table
                pl.BlockSpec((V, Dp), lambda b, ctx, tgt: (0, 0)),  # resident v table
            ],
            out_specs=out_spec,
            scratch_shapes=[
                pltpu.VMEM((TB, Dp), jnp.float32),    # per-row context sums
                pltpu.VMEM((TB, Dp), jnp.float32),    # gathered target rows
            ],
        )
        vmem_need = 2 * table_bytes + 2 * TB * Dp * 4 + num_blocks * 128 * 4
        dim_sem = ("parallel",)            # blocks independent -> megacore friendly
    else:
        kernel = functools.partial(_cbow_gather_kernel,
                                   C=C, num_pos=Bp, num_valid=B)
        grid_spec = pltpu.PrefetchScalarGridSpec(
            num_scalar_prefetch=2,
            grid=(num_blocks,),
            in_specs=[
                pl.BlockSpec(memory_space=pl.ANY),    # u table stays in HBM
                pl.BlockSpec(memory_space=pl.ANY),    # v table stays in HBM
            ],
            out_specs=out_spec,
            scratch_shapes=[
                pltpu.VMEM((2, C * TB, Dp), u_emb.dtype),  # double-buffered ctx rows
                pltpu.VMEM((2, TB, Dp), v_emb.dtype),      # double-buffered tgt rows
                pltpu.SemaphoreType.DMA((2,)),             # one sem per slot (u)
                pltpu.SemaphoreType.DMA((2,)),             # one sem per slot (v)
            ],
        )
        vmem_need = 2 * (C + 1) * TB * Dp * itemsize + num_blocks * 128 * 4
        # Cross-grid-step prefetch priming needs the batch axis to run sequentially.
        dim_sem = ("arbitrary",)

    vmem_limit = int(min(56 * 1024 * 1024,
                         max(16 * 1024 * 1024, vmem_need + (4 << 20))))

    partials = pl.pallas_call(
        kernel,
        out_shape=out_shape,
        grid_spec=grid_spec,
        compiler_params=pltpu.CompilerParams(
            dimension_semantics=dim_sem,
            vmem_limit_bytes=vmem_limit),
    )(ctx_idx, tgt_idx, u_emb, v_emb)

    # Tiny final reduction over num_blocks lane-dense partials, plus the negation.
    return -jnp.sum(partials[:, 0])


def cbow_reference(pos_u, pos_v, neg_u, neg_v, u_emb, v_emb):
    u = u_emb.astype(jnp.float32)
    v = v_emb.astype(jnp.float32)
    pos_score = _log_sigmoid(jnp.sum(u[pos_u].sum(axis=1) * v[pos_v], axis=1))
    neg_score = _log_sigmoid(-jnp.sum(u[neg_u].sum(axis=1) * v[neg_v], axis=1))
    return -(pos_score.sum() + neg_score.sum())


if __name__ == "__main__":
    V, D = 512, 128        # vocab_size, embedding_dim
    Bp, Bn, C = 8, 8, 4    # positive batch, negative batch, context window

    key = jax.random.PRNGKey(0)
    keys = jax.random.split(key, 10)

    # Parameter init per CBOWModel.init_embeddings(): u ~ U(-0.5/D, 0.5/D), v = 0.
    initrange = 0.5 / D
    u_emb = jax.random.uniform(keys[0], (V, D), jnp.float32, -initrange, initrange)
    v_emb0 = jnp.zeros((V, D), jnp.float32)
    v_emb = jax.random.uniform(keys[1], (V, D), jnp.float32, -initrange, initrange)

    pos_u = jax.random.randint(keys[2], (Bp, C), 0, V, dtype=jnp.int32)
    pos_v = jax.random.randint(keys[3], (Bp,), 0, V, dtype=jnp.int32)
    neg_u = jax.random.randint(keys[4], (Bn, C), 0, V, dtype=jnp.int32)
    neg_v = jax.random.randint(keys[5], (Bn,), 0, V, dtype=jnp.int32)

    def check(got, want, tol=1e-5):
        got = jax.block_until_ready(got)
        assert jnp.allclose(got, want, rtol=tol, atol=tol), (got, want)

    # 1) Faithful module init (v_embeddings = 0), resident-table fast path.
    check(cbow_forward(pos_u, pos_v, neg_u, neg_v, u_emb, v_emb0),
          cbow_reference(pos_u, pos_v, neg_u, neg_v, u_emb, v_emb0))

    # 2) Non-zero v embeddings, resident path; also a multi-block resident run.
    check(cbow_forward(pos_u, pos_v, neg_u, neg_v, u_emb, v_emb),
          cbow_reference(pos_u, pos_v, neg_u, neg_v, u_emb, v_emb))
    check(cbow_forward(pos_u, pos_v, neg_u, neg_v, u_emb, v_emb, block_b=8),
          cbow_reference(pos_u, pos_v, neg_u, neg_v, u_emb, v_emb))

    # 3) Ragged batch + embedding_dim not a multiple of 128 (batch + lane padding).
    Bp2, Bn2, C2, D2 = 5, 7, 3, 100
    u2 = jax.random.uniform(keys[6], (V, D2), jnp.float32, -initrange, initrange)
    v2 = jax.random.uniform(keys[7], (V, D2), jnp.float32, -initrange, initrange)
    pos_u2 = jax.random.randint(keys[8], (Bp2, C2), 0, V, dtype=jnp.int32)
    neg_u2 = jax.random.randint(keys[9], (Bn2, C2), 0, V, dtype=jnp.int32)
    pos_v2 = pos_u2[:, 0]
    neg_v2 = neg_u2[:, 0]
    check(cbow_forward(pos_u2, pos_v2, neg_u2, neg_v2, u2, v2),
          cbow_reference(pos_u2, pos_v2, neg_u2, neg_v2, u2, v2))

    # 4) Forced HBM row-gather path with multiple grid blocks so both double-buffer
    #    slots and the cross-step prefetch are exercised; bf16 tables kept native.
    Bp3, Bn3 = 13, 11
    pos_u3 = jax.random.randint(keys[2], (Bp3, C), 0, V, dtype=jnp.int32)
    pos_v3 = jax.random.randint(keys[3], (Bp3,), 0, V, dtype=jnp.int32)
    neg_u3 = jax.random.randint(keys[4], (Bn3, C), 0, V, dtype=jnp.int32)
    neg_v3 = jax.random.randint(keys[5], (Bn3,), 0, V, dtype=jnp.int32)
    u_bf = u_emb.astype(jnp.bfloat16)
    v_bf = v_emb.astype(jnp.bfloat16)
    check(cbow_forward(pos_u3, pos_v3, neg_u3, neg_v3, u_bf, v_bf,
                       block_b=8, force_gather=True),
          cbow_reference(pos_u3, pos_v3, neg_u3, neg_v3, u_bf, v_bf),
          tol=1e-3)

    # 5) Gather path with f32 tables and the default block size (single padded block).
    check(cbow_forward(pos_u3, pos_v3, neg_u3, neg_v3, u_emb, v_emb,
                       force_gather=True),
          cbow_reference(pos_u3, pos_v3, neg_u3, neg_v3, u_emb, v_emb))

    # TODO(synk): save_embedding (file I/O) is not part of forward and is not translated.
    print("KERNEL_OK")
</pallas_src>

<mosaic_0001>
module attributes {stable_mosaic.version = 11 : i64} {
  func.func @_cbow_resident_kernel(%arg0: i32, %arg1: memref<64xi32, #tpu.memory_space<smem>>, %arg2: memref<16xi32, #tpu.memory_space<smem>>, %arg3: memref<512x128xf32, #tpu.memory_space<vmem>>, %arg4: memref<512x128xf32, #tpu.memory_space<vmem>>, %arg5: memref<1x128xf32, #tpu.memory_space<vmem>>, %arg6: memref<16x128xf32, #tpu.memory_space<vmem>>, %arg7: memref<16x128xf32, #tpu.memory_space<vmem>>) attributes {dimension_semantics = [#tpu.dimension_semantics<parallel>], iteration_bounds = array<i64: 1>, scalar_prefetch = 2 : i64, scratch_operands = 2 : i64, tpu.core_type = #tpu.core_type<tc>, window_params = [{pipeline_mode = #tpu.pipeline_mode<synchronous>, transform_indices = @transform_0, window_bounds = array<i64: 512, 128>}, {pipeline_mode = #tpu.pipeline_mode<synchronous>, transform_indices = @transform_1, window_bounds = array<i64: 512, 128>}, {transform_indices = @transform_2, window_bounds = array<i64: 1, 128>}]} {
    %c16_i32 = arith.constant 16 : i32
    %0 = arith.muli %arg0, %c16_i32 : i32
    %c0_i32 = arith.constant 0 : i32
    %c16_i32_0 = arith.constant 16 : i32
    %1 = arith.addi %c0_i32, %c16_i32_0 : i32
    %c1_i32 = arith.constant 1 : i32
    scf.for %arg8 = %c0_i32 to %1 step %c1_i32  : i32 {
      %36 = arith.addi %0, %arg8 : i32
      %37 = arith.index_cast %36 : i32 to index
      %38 = memref.load %arg2[%37] : memref<16xi32, #tpu.memory_space<smem>>
      %39 = arith.index_cast %38 : i32 to index
      %c0_14 = arith.constant 0 : index
      %40 = vector.load %arg4[%39, %c0_14] : memref<512x128xf32, #tpu.memory_space<vmem>>, vector<1x128xf32>
      %41 = arith.index_cast %arg8 : i32 to index
      %c0_15 = arith.constant 0 : index
      %42 = vector.load %arg7[%41, %c0_15] : memref<16x128xf32, #tpu.memory_space<vmem>>, vector<1x128xf32>
      tpu.vector_store %arg7[%41, %c0_15], %40 {strides = array<i32>} : memref<16x128xf32, #tpu.memory_space<vmem>>, vector<1x128xf32>,
      %c4_i32 = arith.constant 4 : i32
      %43 = arith.muli %36, %c4_i32 : i32
      %44 = arith.index_cast %43 : i32 to index
      %45 = memref.load %arg1[%44] : memref<64xi32, #tpu.memory_space<smem>>
      %46 = arith.index_cast %45 : i32 to index
      %c0_16 = arith.constant 0 : index
      %47 = vector.load %arg3[%46, %c0_16] : memref<512x128xf32, #tpu.memory_space<vmem>>, vector<1x128xf32>
      %c4_i32_17 = arith.constant 4 : i32
      %48 = arith.muli %36, %c4_i32_17 : i32
      %c1_i32_18 = arith.constant 1 : i32
      %49 = arith.addi %48, %c1_i32_18 : i32
      %50 = arith.index_cast %49 : i32 to index
      %51 = memref.load %arg1[%50] : memref<64xi32, #tpu.memory_space<smem>>
      %52 = arith.index_cast %51 : i32 to index
      %c0_19 = arith.constant 0 : index
      %53 = vector.load %arg3[%52, %c0_19] : memref<512x128xf32, #tpu.memory_space<vmem>>, vector<1x128xf32>
      %54 = arith.addf %47, %53 : vector<1x128xf32>
      %c4_i32_20 = arith.constant 4 : i32
      %55 = arith.muli %36, %c4_i32_20 : i32
      %c2_i32 = arith.constant 2 : i32
      %56 = arith.addi %55, %c2_i32 : i32
      %57 = arith.index_cast %56 : i32 to index
      %58 = memref.load %arg1[%57] : memref<64xi32, #tpu.memory_space<smem>>
      %59 = arith.index_cast %58 : i32 to index
      %c0_21 = arith.constant 0 : index
      %60 = vector.load %arg3[%59, %c0_21] : memref<512x128xf32, #tpu.memory_space<vmem>>, vector<1x128xf32>
      %61 = arith.addf %54, %60 : vector<1x128xf32>
      %c4_i32_22 = arith.constant 4 : i32
      %62 = arith.muli %36, %c4_i32_22 : i32
      %c3_i32 = arith.constant 3 : i32
      %63 = arith.addi %62, %c3_i32 : i32
      %64 = arith.index_cast %63 : i32 to index
      %65 = memref.load %arg1[%64] : memref<64xi32, #tpu.memory_space<smem>>
      %66 = arith.index_cast %65 : i32 to index
      %c0_23 = arith.constant 0 : index
      %67 = vector.load %arg3[%66, %c0_23] : memref<512x128xf32, #tpu.memory_space<vmem>>, vector<1x128xf32>
      %68 = arith.addf %61, %67 : vector<1x128xf32>
      %69 = arith.index_cast %arg8 : i32 to index
      %c0_24 = arith.constant 0 : index
      %70 = vector.load %arg6[%69, %c0_24] : memref<16x128xf32, #tpu.memory_space<vmem>>, vector<1x128xf32>
      tpu.vector_store %arg6[%69, %c0_24], %68 {strides = array<i32>} : memref<16x128xf32, #tpu.memory_space<vmem>>, vector<1x128xf32>,
    }
    %c16_i32_1 = arith.constant 16 : i32
    %c0 = arith.constant 0 : index
    %c0_2 = arith.constant 0 : index
    %2 = vector.load %arg6[%c0, %c0_2] : memref<16x128xf32, #tpu.memory_space<vmem>>, vector<16x128xf32>
    %c0_3 = arith.constant 0 : index
    %c0_4 = arith.constant 0 : index
    %3 = vector.load %arg7[%c0_3, %c0_4] : memref<16x128xf32, #tpu.memory_space<vmem>>, vector<16x128xf32>
    %4 = arith.mulf %2, %3 : vector<16x128xf32>
    %cst = arith.constant dense<0.000000e+00> : vector<16xf32>
    %5 = vector.multi_reduction <add>, %4, %cst [1] : vector<16x128xf32> to vector<16xf32>
    %6 = vector.shape_cast %5 : vector<16xf32> to vector<16x1xf32>
    %7 = tpu.iota {dimensions = array<i32: 0>} : vector<16x1xi32>
    %8 = vector.broadcast %0 : i32 to vector<16x1xi32>
    %9 = arith.addi %8, %7 : vector<16x1xi32>
    %c8_i32 = arith.constant 8 : i32
    %10 = vector.broadcast %c8_i32 : i32 to vector<16x1xi32>
    %11 = arith.cmpi slt, %9, %10 : vector<16x1xi32>
    %cst_5 = arith.constant 1.000000e+00 : f32
    %cst_6 = arith.constant -1.000000e+00 : f32
    %12 = vector.broadcast %cst_5 : f32 to vector<16x1xf32>
    %13 = vector.broadcast %cst_6 : f32 to vector<16x1xf32>
    %14 = arith.select %11, %12, %13 : vector<16x1xi1>, vector<16x1xf32>
    %c16_i32_7 = arith.constant 16 : i32
    %15 = vector.broadcast %c16_i32_7 : i32 to vector<16x1xi32>
    %16 = arith.cmpi slt, %9, %15 : vector<16x1xi32>
    %17 = arith.mulf %14, %6 : vector<16x1xf32>
    %cst_8 = arith.constant 0.000000e+00 : f32
    %18 = vector.broadcast %cst_8 : f32 to vector<16x1xf32>
    %19 = arith.minimumf %17, %18 : vector<16x1xf32>
    %20 = math.absf %17 : vector<16x1xf32>
    %cst_9 = arith.constant 0.000000e+00 : f32
    %21 = vector.broadcast %cst_9 : f32 to vector<16x1xf32>
    %22 = arith.subf %21, %20 : vector<16x1xf32>
    %23 = math.exp %22 : vector<16x1xf32>
    %24 = math.log1p %23 : vector<16x1xf32>
    %25 = arith.subf %19, %24 : vector<16x1xf32>
    %cst_10 = arith.constant 0.000000e+00 : f32
    %26 = vector.broadcast %cst_10 : f32 to vector<16x1xf32>
    %27 = arith.select %16, %25, %26 : vector<16x1xi1>, vector<16x1xf32>
    %28 = vector.shape_cast %27 : vector<16x1xf32> to vector<1x16x1xf32>
    %cst_11 = arith.constant dense<0.000000e+00> : vector<1xf32>
    %29 = vector.multi_reduction <add>, %28, %cst_11 [1, 2] : vector<1x16x1xf32> to vector<1xf32>
    %30 = vector.shape_cast %29 : vector<1xf32> to vector<1x1x1xf32>
    %31 = vector.extract %30[0, 0, 0] : f32 from vector<1x1x1xf32>
    %32 = vector.broadcast %31 : f32 to vector<1x1xf32>
    %33 = vector.shape_cast %32 : vector<1x1xf32> to vector<1x1xf32>
    %34 = vector.broadcast %33 : vector<1x1xf32> to vector<1x128xf32>
    %c0_12 = arith.constant 0 : index
    %c0_13 = arith.constant 0 : index
    %35 = vector.load %arg5[%c0_12, %c0_13] : memref<1x128xf32, #tpu.memory_space<vmem>>, vector<1x128xf32>
    tpu.vector_store %arg5[%c0_12, %c0_13], %34 {strides = array<i32>} : memref<1x128xf32, #tpu.memory_space<vmem>>, vector<1x128xf32>,
    return
  }
  func.func @transform_0(%arg0: i32, %arg1: memref<64xi32, #tpu.memory_space<smem>>, %arg2: memref<16xi32, #tpu.memory_space<smem>>) -> (i32, i32) {
    %c0_i32 = arith.constant 0 : i32
    %c0_i32_0 = arith.constant 0 : i32
    %c0_i32_1 = arith.constant 0 : i32
    return %c0_i32, %c0_i32_0 : i32, i32
  }
  func.func @transform_1(%arg0: i32, %arg1: memref<64xi32, #tpu.memory_space<smem>>, %arg2: memref<16xi32, #tpu.memory_space<smem>>) -> (i32, i32) {
    %c0_i32 = arith.constant 0 : i32
    %c0_i32_0 = arith.constant 0 : i32
    %c0_i32_1 = arith.constant 0 : i32
    return %c0_i32, %c0_i32_0 : i32, i32
  }
  func.func @transform_2(%arg0: i32, %arg1: memref<64xi32, #tpu.memory_space<smem>>, %arg2: memref<16xi32, #tpu.memory_space<smem>>) -> (i32, i32) {
    %c0_i32 = arith.constant 0 : i32
    %c0_i32_0 = arith.constant 0 : i32
    return %arg0, %c0_i32 : i32, i32
  }
}

</mosaic_0001>

<bundles_post_ra>
// kernel: tpu_custom_call.1
= control target key start
LH: loop header
LB: loop body
LE: loop exit
PB: predicated region body
PF: predicated region fallthrough
CT: control target
= control target key end

     0   :  { %s408_s0 = inlined_call_operand.hbm [shape: s32[64], index: 0, kind: input, shape index: {}]   ;;  %s409_s2 = inlined_call_operand.hbm [shape: f32[512,128], index: 2, kind: input, shape index: {}]   ;;  %s410_s3 = inlined_call_operand.hbm [shape: f32[512,128], index: 3, kind: input, shape index: {}]   ;;  %s411_s4 = inlined_call_operand.hbm [shape: f32[1,128], index: 4, kind: output, shape index: {}]   ;;  %s412_s1 = inlined_call_operand.vmem [shape: s32[16], index: 1, kind: input, shape index: {}]  }
   0x1   :  { %s209_s17 = scalar_lea.hbm %s408_s0, 16 }
   0x2   :  { %p210_p0 = scmp.ne.s32.totalorder %s408_s0, %s209_s17  ;;  %p213_p1 = scmp.lt.u32.totalorder %s209_s17, %s408_s0 }
   0x4   :  { %p215_p2 = pnand %p213_p1, %p210_p0 }
   0x6   :  { %218 = shalt.err (!%p215_p2)  }
   0x7   :  { %s313_s22 = smov [#allocation5]   ;;  %s11_s27 = sshll.u32 %s412_s1, 4  ;;  %s12_s27 = int_to_ptr.vmem [resolvable:$true] %s11_s27 }
   0x8   :  { %10 = dma.hbm_to_smem %s408_s0, 16, %s313_s22, [#allocation4] }
   0x9   :  { %s219_s28 = scalar_lea.vmem %s12_s27, 16  ;;  %p224_p4 = scmp.lt.s32.totalorder %s12_s27, %s12_s27 }
   0xa   :  { %p220_p3 = scmp.ne.s32.totalorder %s12_s27, %s219_s28  ;;  %p225_p5 = scmp.lt.s32.totalorder %s219_s28, %s219_s28 }
   0xc   :  { %p226_p6 = por %p225_p5, %p224_p4 }
   0xe   :  { %p227_p7 = pnand %p226_p6, %p220_p3 }
  0x10   :  { %230 = shalt.err (!%p227_p7)  }
  0x11   :  { %s314_s29 = smov [#allocation6]  }
  0x12   :  { %14 = dma.vmem_to_smem %s12_s27, 16, %s314_s29, [#allocation4] }
  0x13   :  { %301 = dma.done.wait [#allocation4], 32 }
  0x14   :  { %302 = vsyncadd [#allocation4], 4294967264 }
  0x15   :  { %16 = sfence }
  0x16   :  { %17 = vsyncpa [#allocation8], 0 }
  0x17   :  { %18 = vsyncpa [#allocation11], 0 }
  0x18   :  { %19 = vsyncpa [#allocation9], 0  ;;  %s315_s0 = smov [#allocation7]   ;;  %s231_s6 = scalar_lea.hbm %s409_s2, 8192 }
  0x19   :  { %s25_s30 = sshll.u32 %s315_s0, 4  ;;  %p232_p8 = scmp.ne.s32.totalorder %s409_s2, %s231_s6  ;;  %s26_s30 = int_to_ptr.vmem [resolvable:$true] %s25_s30 }
  0x1a   :  { %p235_p9 = scmp.lt.u32.totalorder %s231_s6, %s409_s2 }
  0x1c   :  { %p237_p10 = pnand %p235_p9, %p232_p8 }
  0x1e   :  { %240 = shalt.err (!%p237_p10)
}
  0x1f   :  { %s241_s11 = scalar_lea.vmem %s26_s30, 8192  ;;  %p246_p12 = scmp.lt.s32.totalorder %s26_s30, %s26_s30 }
  0x20   :  { %p242_p11 = scmp.ne.s32.totalorder %s26_s30, %s241_s11  ;;  %p247_p13 = scmp.lt.s32.totalorder %s241_s11, %s241_s11 }
  0x22   :  { %p248_p0 = por %p247_p13, %p246_p12 }
  0x24   :  { %p249_p1 = pnand %p248_p0, %p242_p11 }
  0x26   :  { %252 = shalt.err (!%p249_p1)
}
  0x27   :  { %s316_s12 = smov 128   ;;  %s317_s13 = smov 8  }
  0x28   :  { %31 = dma.hbm_to_vmem [thread:$0]  %s409_s2, 8192, %s26_s30, [#allocation8], %s316_s12, %s316_s12, %s317_s13  }
  0x29   :  { %s318_s16 = smov [#allocation10]   ;;  %s253_s20 = scalar_lea.hbm %s410_s3, 8192 }
  0x2a   :  { %s37_s17 = sshll.u32 %s318_s16, 4  ;;  %p254_p2 = scmp.ne.s32.totalorder %s410_s3, %s253_s20  ;;  %s38_s17 = int_to_ptr.vmem [resolvable:$true] %s37_s17 }
  0x2b   :  { %p257_p3 = scmp.lt.u32.totalorder %s253_s20, %s410_s3 }
  0x2d   :  { %p259_p4 = pnand %p257_p3, %p254_p2 }
  0x2f   :  { %262 = shalt.err (!%p259_p4)
}
  0x30   :  { %s263_s25 = scalar_lea.vmem %s38_s17, 8192  ;;  %p268_p6 = scmp.lt.s32.totalorder %s38_s17, %s38_s17 }
  0x31   :  { %p264_p5 = scmp.ne.s32.totalorder %s38_s17, %s263_s25  ;;  %p269_p7 = scmp.lt.s32.totalorder %s263_s25, %s263_s25 }
  0x33   :  { %p270_p8 = por %p269_p7, %p268_p6 }
  0x35   :  { %p271_p9 = pnand %p270_p8, %p264_p5 }
  0x37   :  { %274 = shalt.err (!%p271_p9)
}
  0x38   :  { %43 = dma.hbm_to_vmem [thread:$0]  %s410_s3, 8192, %s38_s17, [#allocation11], %s316_s12, %s316_s12, %s317_s13  }
  0x39   :  { %303 = dma.done.wait [#allocation8], 8192  }
  0x3a   :  { %304 = vsyncadd [#allocation8], 4294959104 }
  0x3b   :  { %305 = dma.done.wait [#allocation11], 8192  }
  0x3c   :  { %306 = vsyncadd [#allocation11], 4294959104  ;;  %s384_s27 = smov 0  }
  0x3d LB: > { %s58_s28 = sld [smem:[#allocation6 + %s311_s27]]  ;;  %s183_s29 = sshll.u32 %s311_s27, 2  ;;  %s311_s27 = sphi %s384_s27, %s56_s27  }
  0x3e   : > { %s64_s0 = sld [smem:[#allocation5 + %s183_s29]]  ;;  %s67_s30 = sadd.s32 1, %s183_s29 }
  0x3f   : > { %s68_s1 = sld [smem:[#allocation5 + %s67_s30]]  ;;  %s72_s3 = sadd.s32 2, %s183_s29 }
  0x40   : > { %s73_s5 = sld [smem:[#allocation5 + %s72_s3]]  ;;  %s77_s6 = sadd.s32 3, %s183_s29 }
  0x41   : > { %s78_s7 = sld [smem:[#allocation5 + %s77_s6]]  ;;  %s61_s9 = scalar_lea.vmem [#allocation3], %s311_s27 }
  0x42   : > { %s82_s14 = scalar_lea.vmem [#allocation2], %s311_s27  ;;  %s56_s27 = sadd.s32 1, %s311_s27  }
  0x43   : > { %s59_s8 = scalar_lea.vmem [#allocation10], %s58_s28  ;;  %p53_p10 = scmp.ge.s32.totalorder %s56_s27, 16  }
  0x44   : > { %v60_v0 = vld [vmem:[%s59_s8] sm:$0x1]  ;;  %s65_s10 = scalar_lea.vmem [#allocation7], %s64_s0  ;;  %vm140_vm2 = vcmask (%p53_p10), 7168   ;;  %s319_s15 = smov (%p53_p10), [#allocation12]  }
  0x45   : > { %62 = vst [vmem:[%s61_s9] sm:$0x1] %v60_v0  ;;  %v66_v1 = vld [vmem:[%s65_s10] sm:$0x1]  ;;  %s69_s11 = scalar_lea.vmem [#allocation7], %s68_s1  ;;  %s161_s16 = sshll.u32 (%p53_p10), %s319_s15, 4  ;;  %s162_s16 = int_to_ptr.vmem [resolvable:$true] %s161_s16 }
  0x46   : > { %v70_v2 = vld [vmem:[%s69_s11] sm:$0x1]  ;;  %s74_s12 = scalar_lea.vmem [#allocation7], %s73_s5  ;;  %s275_s18 = scalar_lea.vmem (%p53_p10), %s162_s16, 16 }
  0x47   : > { %v71_v3 = vadd.f32 %v70_v2, %v66_v1  ;;  %v75_v4 = vld [vmem:[%s74_s12] sm:$0x1]  ;;  %s79_s13 = scalar_lea.vmem [#allocation7], %s78_s7  ;;  %55 = sbr.rel (!%p53_p10) target bundleno = 61 (0x3d), region = 50 }
  0x48   : > { %v80_v5 = vld [vmem:[%s79_s13] sm:$0x1]  ;;  %p276_p11 = scmp.ne.s32.totalorder (%p53_p10), %s162_s16, %s275_s18  ;;  %s279_s19 = scalar_lea.vmem (%p53_p10), %s162_s16, 32 }
  0x49   : > { %v76_v6 = vadd.f32 %v75_v4, %v71_v3  ;;  %p280_p12 = scmp.lt.s32.totalorder (%p53_p10), %s162_s16, %s162_s16  ;;  %p281_p13 = scmp.lt.s32.totalorder (%p53_p10), %s279_s19, %s275_s18 }
  0x4b   : > { %v81_v7 = vadd.f32 %v80_v5, %v76_v6  ;;  %p282_p0 = por (%p53_p10), %p281_p13, %p280_p12 }
  0x4c   :  { %v87_v9 = vld [vmem:[#allocation3 + $0x8] sm:$0xff] (%p53_p10)  ;;  %v86_v12 = vld [vmem:[#allocation3] sm:$0xff] (%p53_p10) }
  0x4d   : > { %83 = vst [vmem:[%s82_s14] sm:$0x1] %v81_v7  ;;  %p283_p1 = pnand (%p53_p10), %p282_p0, %p276_p11 }
  0x54   :  { %v85_v8 = vld [vmem:[#allocation2 + $0x8] sm:$0xff]  ;;  %v84_v10 = vld [vmem:[#allocation2] sm:$0xff] }
  0x55   :  { %v89_v11 = vmul.f32 %v87_v9, %v85_v8  ;;  %v88_v13 = vmul.f32 %v86_v12, %v84_v10 }
  0x57   :  { %92 = vadd.xlane.f32.xlu0 %v89_v11 }
  0x5b   :  { %90 = vadd.xlane.f32.xlu0 %v88_v13 }
  0xe4   :  { %v93_v14 = vpop.xlane.xlu0 %92 }
  0xe5   :  { %v107_v15 = vmul.f32 -1.0, %v93_v14 }
  0xe7   :  { %v111_v16 = vand.u32 2147483647, %v107_v15  ;;  %v109_v37 = vmin.f32 %v107_v15, 0.0 }
  0xe8   :  { %v91_v17 = vpop.xlane.xlu0 %90 }
  0xe9   :  { %v113_v18 = vsub.f32 0.0, %v111_v16  ;;  %v110_v19 = vand.u32 2147483647, %v91_v17  ;;  %v108_v41 = vmin.f32 %v91_v17, 0.0 }
  0xeb   :  { %v116_v20 = vmul.f32 1.442695, %v113_v18  ;;  %v112_v21 = vsub.f32 0.0, %v110_v19 }
  0xed   :  { %201 = vpow2.f32 %v116_v20  ;;  %v114_v22 = vmul.f32 1.442695, %v112_v21 }
  0xef   :  { %203 = vpow2.f32 %v114_v22 }
  0xf7   :  { %v202_v23 = vpop.eup %201 }
  0xf8   :  { %v127_v24 = vadd.f32 1.0, %v202_v23  ;;  %v130_v27 = vmul.f32 -0.5, %v202_v23  ;;  %v133_v30 = vand.u32 2147483647, %v202_v23 }
  0xf9   :  { %v204_v25 = vpop.eup %203 }
  0xfa   :  { %v118_v26 = vadd.f32 1.0, %v204_v25  ;;  %205 = vlog2.f32 %v127_v24  ;;  %v121_v28 = vmul.f32 -0.5, %v204_v25  ;;  %v131_v29 = vadd.f32 1.0, %v130_v27 }
  0xfb   :  { %v124_v33 = vand.u32 2147483647, %v204_v25  ;;  %vm134_vm0 = vcmp.lt.f32.partialorder %v133_v30, 0.0004427343 }
  0xfc   :  { %207 = vlog2.f32 %v118_v26  ;;  %v122_v31 = vadd.f32 1.0, %v121_v28  ;;  %v132_v35 = vmul.f32 %v202_v23, %v131_v29 }
  0xfd   :  { %vm125_vm1 = vcmp.lt.f32.partialorder %v124_v33, 0.0004427343 }
  0xfe   :  { %v123_v39 = vmul.f32 %v204_v25, %v122_v31 }
 0x104   :  { %v206_v32 = vpop.eup %205 }
 0x105   :  { %v129_v34 = vmul.f32 0.6931472, %v206_v32 }
 0x106   :  { %v208_v36 = vpop.eup %207 }
 0x107   :  { %v120_v38 = vmul.f32 0.6931472, %v208_v36  ;;  %v135_v40 = vsel %vm134_vm0, %v132_v35, %v129_v34 }
 0x108   :  { %v137_v42 = vsub.f32 %v109_v37, %v135_v40 }
 0x109   :  { %v126_v43 = vsel %vm125_vm1, %v123_v39, %v120_v38 }
 0x10a   :  { %v136_v44 = vsub.f32 %v108_v41, %v126_v43  ;;  %v142_v46 = vsel %vm140_vm2, %v137_v42, 0.0 }
 0x10c   :  { %v141_v45 = vsel %vm140_vm2, %v136_v44, 0.0 }
 0x10d   :  { %v143_v47 = vadd.f32 %v142_v46, %v141_v45 }
 0x10f   :  { %144 = vadd.xlane.f32.xlu1 %v143_v47 }
 0x19c   :  { %v145_v48 = vpop.xlane.xlu1 %144 }
 0x19d   :  { %v146_v49 = vrot.slane %v145_v48, 4 }
 0x19f   :  { %v147_v50 = vadd.f32 %v146_v49, %v145_v48 }
 0x1a1   :  { %v148_v51 = vrot.slane %v147_v50, 2 }
 0x1a3   :  { %v149_v52 = vadd.f32 %v148_v51, %v147_v50 }
 0x1a5   :  { %v150_v53 = vrot.slane %v149_v52, 1 }
 0x1a7   :  { %v151_v54 = vadd.f32 %v150_v53, %v149_v52 }
 0x1a9   :  { %184 = vpush %v151_v54 }
 0x1da   :  { %s185_s17 = spop %184 }
 0x1db   :  { %v153_v55 = vstv %s185_s17 }
 0x1dc   :  { %154 = vst [vmem:[#allocation12] sm:$0x1] %v153_v55 }
 0x1dd   :  { %286 = shalt.err (!%p283_p1)
}
 0x1de   :  { %s287_s22 = scalar_lea.hbm %s411_s4, 16 }
 0x1df   :  { %p288_p2 = scmp.ne.s32.totalorder %s411_s4, %s287_s22  ;;  %p291_p3 = scmp.lt.u32.totalorder %s287_s22, %s411_s4 }
 0x1e1   :  { %p293_p4 = pnand %p291_p3, %p288_p2 }
 0x1e3   :  { %296 = shalt.err (!%p293_p4)
}
 0x1e4   :  { %164 = dma.vmem_to_hbm [thread:$0]  %s162_s16, 16, %s411_s4, [#allocation9]  }
 0x1e5   :  { %307 = dma.done.wait [#allocation9], 16  }
 0x1e6   :  { %308 = vsyncadd [#allocation9], 4294967280 }
 0x1e7   :  { %168 = vsyncpa [#allocation8], 1 }
 0x1e8   :  { %169 = vsyncpa [#allocation11], 1 }
 0x1e9   :  { %170 = vsyncpa [#allocation9], 1 }

</bundles_post_ra>
